<compile_context>
chip_gen: v7x
topology: tpu7x:2x2x1
jax: 0.10.0
libtpu: 0.0.40
codegen_flags: <defaults>
</compile_context>

<pallas_src>
import jax
import jax.numpy as jnp
from jax.experimental import pallas as pl
from jax.experimental.pallas import tpu as pltpu


_LANE = 128              # samples per interleaved 256-wide row
_ROW_ALIGN = 8           # sublane alignment for row blocks
_MAX_BLOCK_ROWS = 2048   # ~2 MiB x-tile + 1 MiB out-tile per grid step


def _linear_sigmoid_kernel(w_ref, b_ref, x_ref, o_ref):
    # w_ref: (256, 128) VMEM, resident de-interleave+contract weight matrix
    # b_ref: (1, 1)   SMEM bias scalar
    # x_ref: (block_rows, 256) VMEM — 128 samples/row, two features interleaved
    # o_ref: (block_rows, 128) VMEM — one output per sample, lane-dense
    z = jnp.dot(x_ref[...], w_ref[...], preferred_element_type=jnp.float32)
    z = z + b_ref[0, 0]
    # Exact sigmoid via a single EUP tanh (no approximate reciprocal).
    o_ref[...] = (0.5 * jnp.tanh(0.5 * z) + 0.5).astype(o_ref.dtype)


def simple_nn_forward(x, w, b):
    """x: (B, 2) f32 (PyTorch layout); w: (1, 2) f32; b: (1,) f32 -> (B, 1)."""
    B, in_f = x.shape
    assert in_f == 2 and w.shape == (1, 2) and b.shape == (1,)

    # Pad B up to a multiple of 1024 (= 8 sublanes * 128 lanes) so the free,
    # row-major reshape below yields whole aligned tiles.  This is the only
    # copy in the wrapper and only happens for ragged B.
    # TODO(synk): a masked partial last row in-kernel would remove this pad.
    align = _ROW_ALIGN * _LANE
    b_pad = ((B + align - 1) // align) * align
    if b_pad != B:
        x = jnp.pad(x, ((0, b_pad - B), (0, 0)))
    rows = b_pad // _LANE

    # Free (no-copy, same linear order) view: row r holds samples
    # r*128 .. r*128+127 with their two features interleaved along lanes.
    x2 = x.reshape(rows, 2 * _LANE)

    # Sparse (256, 128) matrix that both contracts the two features and
    # de-interleaves samples onto dense lanes: W[2k, k] = w0, W[2k+1, k] = w1.
    c = jax.lax.broadcasted_iota(jnp.int32, (2 * _LANE, _LANE), 0)
    k = jax.lax.broadcasted_iota(jnp.int32, (2 * _LANE, _LANE), 1)
    w_big = (jnp.where(c == 2 * k, w[0, 0], 0.0)
             + jnp.where(c == 2 * k + 1, w[0, 1], 0.0)).astype(jnp.float32)
    b_s = b.reshape(1, 1).astype(jnp.float32)

    # Block size: big steps to amortize per-step overhead, but >= 2 blocks once
    # there is enough work so v7x's second TensorCore gets used.
    if rows <= _ROW_ALIGN:
        block_rows = rows
    else:
        half = -(-rows // 2)
        half = ((half + _ROW_ALIGN - 1) // _ROW_ALIGN) * _ROW_ALIGN
        block_rows = min(_MAX_BLOCK_ROWS, half)
    n_blocks = pl.cdiv(rows, block_rows)

    out2 = pl.pallas_call(
        _linear_sigmoid_kernel,
        out_shape=jax.ShapeDtypeStruct((rows, _LANE), x.dtype),
        grid_spec=pltpu.PrefetchScalarGridSpec(
            num_scalar_prefetch=0,
            grid=(n_blocks,),
            in_specs=[
                # Resident weight matrix (same block every step -> DMA'd once).
                pl.BlockSpec((2 * _LANE, _LANE), lambda i: (0, 0)),
                # Bias scalar in SMEM.
                pl.BlockSpec((1, 1), lambda i: (0, 0), memory_space=pltpu.SMEM),
                # Row-major, sublane+lane dense x tile.
                pl.BlockSpec((block_rows, 2 * _LANE), lambda i: (i, 0)),
            ],
            out_specs=pl.BlockSpec((block_rows, _LANE), lambda i: (i, 0)),
        ),
        compiler_params=pltpu.CompilerParams(
            dimension_semantics=("parallel",),      # megacore split on v7x
            vmem_limit_bytes=32 * 1024 * 1024,      # fits v5e/v6e/v7x budgets
        ),
    )(w_big, b_s, x2)

    out = out2.reshape(b_pad, 1)
    if b_pad != B:
        out = out[:B]
    return out


if __name__ == "__main__":
    key = jax.random.PRNGKey(0)
    kx, kw, kb = jax.random.split(key, 3)

    B, IN_F, OUT_F = 8, 2, 1
    x = jax.random.normal(kx, (B, IN_F), dtype=jnp.float32)

    # Deterministic params mimicking nn.Linear's uniform(-1/sqrt(in), 1/sqrt(in)).
    bound = 1.0 / jnp.sqrt(jnp.float32(IN_F))
    w = jax.random.uniform(kw, (OUT_F, IN_F), minval=-bound, maxval=bound,
                           dtype=jnp.float32)
    b = jax.random.uniform(kb, (OUT_F,), minval=-bound, maxval=bound,
                           dtype=jnp.float32)

    out = simple_nn_forward(x, w, b)
    jax.block_until_ready(out)

    # Exact-math kernel (f32 matmul + exact tanh sigmoid) -> tight tolerance.
    ref = jax.nn.sigmoid(x @ w.T + b)
    assert out.shape == (B, OUT_F)
    assert jnp.allclose(out, ref, atol=1e-5, rtol=1e-5), "mismatch vs reference"
    print("KERNEL_OK")
</pallas_src>

<mosaic_0001>
module attributes {stable_mosaic.version = 11 : i64} {
  func.func @_linear_sigmoid_kernel(%arg0: i32, %arg1: memref<256x128xf32, #tpu.memory_space<vmem>>, %arg2: memref<1x1xf32, #tpu.memory_space<smem>>, %arg3: memref<8x256xf32, #tpu.memory_space<vmem>>, %arg4: memref<8x128xf32, #tpu.memory_space<vmem>>) attributes {dimension_semantics = [#tpu.dimension_semantics<parallel>], iteration_bounds = array<i64: 1>, scalar_prefetch = 0 : i64, scratch_operands = 0 : i64, tpu.core_type = #tpu.core_type<tc>, window_params = [{pipeline_mode = #tpu.pipeline_mode<synchronous>, transform_indices = @transform_0, window_bounds = array<i64: 256, 128>}, {transform_indices = @transform_1, window_bounds = array<i64: 1, 1>}, {transform_indices = @transform_2, window_bounds = array<i64: 8, 256>}, {transform_indices = @transform_3, window_bounds = array<i64: 8, 128>}]} {
    %c0 = arith.constant 0 : index
    %c0_0 = arith.constant 0 : index
    %0 = vector.load %arg3[%c0, %c0_0] : memref<8x256xf32, #tpu.memory_space<vmem>>, vector<8x256xf32>
    %c0_1 = arith.constant 0 : index
    %c0_2 = arith.constant 0 : index
    %1 = vector.load %arg1[%c0_1, %c0_2] : memref<256x128xf32, #tpu.memory_space<vmem>>, vector<256x128xf32>
    %cst = arith.constant dense<0.000000e+00> : vector<8x128xf32>
    %2 = tpu.matmul %0, %1, %cst {dimension_numbers = #tpu.dot_dimension_numbers<[1], [0], [0], [1], [0, 0, 1, 1], [], []>} : vector<8x256xf32>, vector<256x128xf32>, vector<8x128xf32> -> vector<8x128xf32>
    %c0_3 = arith.constant 0 : index
    %c0_4 = arith.constant 0 : index
    %3 = memref.load %arg2[%c0_3, %c0_4] : memref<1x1xf32, #tpu.memory_space<smem>>
    %4 = vector.broadcast %3 : f32 to vector<8x128xf32>
    %5 = arith.addf %2, %4 : vector<8x128xf32>
    %cst_5 = arith.constant 5.000000e-01 : f32
    %6 = vector.broadcast %cst_5 : f32 to vector<8x128xf32>
    %7 = arith.mulf %6, %5 : vector<8x128xf32>
    %8 = math.tanh %7 : vector<8x128xf32>
    %cst_6 = arith.constant 5.000000e-01 : f32
    %9 = vector.broadcast %cst_6 : f32 to vector<8x128xf32>
    %10 = arith.mulf %9, %8 : vector<8x128xf32>
    %cst_7 = arith.constant 5.000000e-01 : f32
    %11 = vector.broadcast %cst_7 : f32 to vector<8x128xf32>
    %12 = arith.addf %10, %11 : vector<8x128xf32>
    %c0_8 = arith.constant 0 : index
    %c0_9 = arith.constant 0 : index
    %13 = vector.load %arg4[%c0_8, %c0_9] : memref<8x128xf32, #tpu.memory_space<vmem>>, vector<8x128xf32>
    tpu.vector_store %arg4[%c0_8, %c0_9], %12 {strides = array<i32>} : memref<8x128xf32, #tpu.memory_space<vmem>>, vector<8x128xf32>,
    return
  }
  func.func @transform_0(%arg0: i32) -> (i32, i32) {
    %c0_i32 = arith.constant 0 : i32
    %c0_i32_0 = arith.constant 0 : i32
    %c0_i32_1 = arith.constant 0 : i32
    return %c0_i32, %c0_i32_0 : i32, i32
  }
  func.func @transform_1(%arg0: i32) -> (i32, i32) {
    %c0_i32 = arith.constant 0 : i32
    %c0_i32_0 = arith.constant 0 : i32
    %c0_i32_1 = arith.constant 0 : i32
    return %c0_i32, %c0_i32_0 : i32, i32
  }
  func.func @transform_2(%arg0: i32) -> (i32, i32) {
    %c0_i32 = arith.constant 0 : i32
    %c0_i32_0 = arith.constant 0 : i32
    return %arg0, %c0_i32 : i32, i32
  }
  func.func @transform_3(%arg0: i32) -> (i32, i32) {
    %c0_i32 = arith.constant 0 : i32
    %c0_i32_0 = arith.constant 0 : i32
    return %arg0, %c0_i32 : i32, i32
  }
}

</mosaic_0001>

<bundles_post_ra>
// kernel: tpu_custom_call.1
= control target key start
LH: loop header
LB: loop body
LE: loop exit
PB: predicated region body
PF: predicated region fallthrough
CT: control target
= control target key end

     0   :  { %9 = vsyncpa [#allocation4], 0  ;;  %s379_s0 = inlined_call_operand.hbm [shape: f32[256,128], index: 0, kind: input, shape index: {}]   ;;  %s380_s1 = inlined_call_operand.<no memory space> [shape: f32[1,1], index: 1, kind: input, shape index: {}]   ;;  %s381_s2 = inlined_call_operand.hbm [shape: f32[8,256], index: 2, kind: input, shape index: {}]   ;;  %s382_s3 = inlined_call_operand.hbm [shape: f32[8,128], index: 3, kind: output, shape index: {}]  }
   0x1   :  { %10 = vsyncpa [#allocation7], 0 }
   0x2   :  { %11 = vsyncpa [#allocation5], 0  ;;  %s315_s12 = smov [#allocation3]   ;;  %s243_s16 = scalar_lea.hbm %s379_s0, 4096 }
   0x3   :  { %s17_s13 = sshll.u32 %s315_s12, 4  ;;  %p244_p0 = scmp.ne.s32.totalorder %s379_s0, %s243_s16  ;;  %s18_s13 = int_to_ptr.vmem [resolvable:$true] %s17_s13 }
   0x4   :  { %p247_p1 = scmp.lt.u32.totalorder %s243_s16, %s379_s0 }
   0x6   :  { %p249_p2 = pnand %p247_p1, %p244_p0 }
   0x8   :  { %252 = shalt.err (!%p249_p2)
}
   0x9   :  { %s253_s21 = scalar_lea.vmem %s18_s13, 4096  ;;  %p258_p4 = scmp.lt.s32.totalorder %s18_s13, %s18_s13 }
   0xa   :  { %p254_p3 = scmp.ne.s32.totalorder %s18_s13, %s253_s21  ;;  %p259_p5 = scmp.lt.s32.totalorder %s253_s21, %s253_s21 }
   0xc   :  { %p260_p6 = por %p259_p5, %p258_p4 }
   0xe   :  { %p261_p7 = pnand %p260_p6, %p254_p3 }
  0x10   :  { %264 = shalt.err (!%p261_p7)
}
  0x11   :  { %s316_s22 = smov 128   ;;  %s317_s23 = smov 8  }
  0x12   :  { %23 = dma.hbm_to_vmem [thread:$0]  %s379_s0, 4096, %s18_s13, [#allocation4], %s316_s22, %s316_s22, %s317_s23  }
  0x13   :  { %s318_s26 = smov [#allocation6]   ;;  %s265_s30 = scalar_lea.hbm %s381_s2, 256 }
  0x14   :  { %s32_s27 = sshll.u32 %s318_s26, 4  ;;  %p266_p8 = scmp.ne.s32.totalorder %s381_s2, %s265_s30  ;;  %s33_s27 = int_to_ptr.vmem [resolvable:$true] %s32_s27 }
  0x15   :  { %p269_p9 = scmp.lt.u32.totalorder %s265_s30, %s381_s2 }
  0x17   :  { %p271_p10 = pnand %p269_p9, %p266_p8 }
  0x19   :  { %274 = shalt.err (!%p271_p10)
}
  0x1a   :  { %s275_s8 = scalar_lea.vmem %s33_s27, 256  ;;  %p280_p12 = scmp.lt.s32.totalorder %s33_s27, %s33_s27 }
  0x1b   :  { %p276_p11 = scmp.ne.s32.totalorder %s33_s27, %s275_s8  ;;  %p281_p13 = scmp.lt.s32.totalorder %s275_s8, %s275_s8 }
  0x1d   :  { %p282_p0 = por %p281_p13, %p280_p12 }
  0x1f   :  { %p283_p1 = pnand %p282_p0, %p276_p11 }
  0x21   :  { %286 = shalt.err (!%p283_p1)
}
  0x22   :  { %35 = dma.hbm_to_vmem [thread:$0]  %s381_s2, 256, %s33_s27, [#allocation7]  }
  0x23   :  { %309 = dma.done.wait [#allocation4], 4096  }
  0x24   :  { %310 = vsyncadd [#allocation4], 4294963200 }
  0x25   :  { %311 = dma.done.wait [#allocation7], 256  }
  0x26   :  { %312 = vsyncadd [#allocation7], 4294967040  ;;  %v60_v0 = vld [vmem:[#allocation3 + $0x80] sm:$0xff]  ;;  %v61_v1 = vld [vmem:[#allocation3 + $0x88] sm:$0xff]  ;;  %v77_v51 = vstv %s380_s1  ;;  %s319_s11 = smov [#allocation8]  }
  0x27   :  { %v44_v2 = vld [vmem:[#allocation3] sm:$0xff]  ;;  %v204_v3 = vpack.c.bf16 %v61_v1, %v60_v0  ;;  %v45_v4 = vld [vmem:[#allocation3 + $0x8] sm:$0xff]  ;;  %v62_v5 = vld [vmem:[#allocation3 + $0x90] sm:$0xff]  ;;  %s159_s12 = sshll.u32 %s319_s11, 4  ;;  %s160_s12 = int_to_ptr.vmem [resolvable:$true] %s159_s12 }
  0x28   :  { %v63_v6 = vld [vmem:[#allocation3 + $0x98] sm:$0xff]  ;;  %v206_v7 = vpack.c.bf16 %v45_v4, %v44_v2  ;;  %v46_v9 = vld [vmem:[#allocation3 + $0x10] sm:$0xff]  ;;  %v64_v11 = vld [vmem:[#allocation3 + $0xa0] sm:$0xff]  ;;  %s287_s13 = scalar_lea.vmem %s160_s12, 128  ;;  %p292_p3 = scmp.lt.s32.totalorder %s160_s12, %s160_s12 }
  0x29   :  { %v208_v8 = vpack.c.bf16 %v63_v6, %v62_v5  ;;  %v47_v10 = vld [vmem:[#allocation3 + $0x18] sm:$0xff]  ;;  %205 = vmatprep.subr.bf16.mxu0 %v204_v3  ;;  %v65_v12 = vld [vmem:[#allocation3 + $0xa8] sm:$0xff]  ;;  %v48_v15 = vld [vmem:[#allocation3 + $0x20] sm:$0xff]  ;;  %p288_p2 = scmp.ne.s32.totalorder %s160_s12, %s287_s13  ;;  %p293_p4 = scmp.lt.s32.totalorder %s287_s13, %s287_s13 }
  0x2a   :  { %207 = vmatpush3.bf16.msra.mxu0 %v206_v7  ;;  %v210_v13 = vpack.c.bf16 %v47_v10, %v46_v9  ;;  %v212_v14 = vpack.c.bf16 %v65_v12, %v64_v11  ;;  %v49_v16 = vld [vmem:[#allocation3 + $0x28] sm:$0xff]  ;;  %v66_v17 = vld [vmem:[#allocation3 + $0xb0] sm:$0xff]  ;;  %v67_v18 = vld [vmem:[#allocation3 + $0xb8] sm:$0xff] }
  0x2b   :  { %209 = vmatprep.subr.bf16.mxu0 %v208_v8  ;;  %v214_v19 = vpack.c.bf16 %v49_v16, %v48_v15  ;;  %v216_v20 = vpack.c.bf16 %v67_v18, %v66_v17  ;;  %v50_v21 = vld [vmem:[#allocation3 + $0x30] sm:$0xff]  ;;  %v51_v22 = vld [vmem:[#allocation3 + $0x38] sm:$0xff]  ;;  %v68_v23 = vld [vmem:[#allocation3 + $0xc0] sm:$0xff]  ;;  %p294_p5 = por %p293_p4, %p292_p3 }
  0x2c   :  { %v69_v24 = vld [vmem:[#allocation3 + $0xc8] sm:$0xff]  ;;  %v218_v26 = vpack.c.bf16 %v51_v22, %v50_v21  ;;  %v52_v28 = vld [vmem:[#allocation3 + $0x40] sm:$0xff]  ;;  %v70_v30 = vld [vmem:[#allocation3 + $0xd0] sm:$0xff] }
  0x2d   :  { %v43_v25 = vld [vmem:[#allocation6 + $0x8] sm:$0xff]  ;;  %v220_v27 = vpack.c.bf16 %v69_v24, %v68_v23  ;;  %v71_v31 = vld [vmem:[#allocation3 + $0xd8] sm:$0xff]  ;;  %v54_v34 = vld [vmem:[#allocation3 + $0x50] sm:$0xff]  ;;  %p295_p6 = pnand %p294_p5, %p288_p2 }
  0x2e   :  { %211 = vmatpush3.bf16.msra.mxu0 %v210_v13  ;;  %142 = vmatprep.mubr.f32.mxu0 %v43_v25  ;;  %v53_v29 = vld [vmem:[#allocation3 + $0x48] sm:$0xff]  ;;  %v224_v33 = vpack.c.bf16 %v71_v31, %v70_v30  ;;  %v55_v35 = vld [vmem:[#allocation3 + $0x58] sm:$0xff]  ;;  %v72_v36 = vld [vmem:[#allocation3 + $0xe0] sm:$0xff] }
  0x2f   :  { %213 = vmatprep.subr.bf16.mxu0 %v212_v14  ;;  %v222_v32 = vpack.c.bf16 %v53_v29, %v52_v28  ;;  %v73_v37 = vld [vmem:[#allocation3 + $0xe8] sm:$0xff]  ;;  %v226_v38 = vpack.c.bf16 %v55_v35, %v54_v34  ;;  %v56_v40 = vld [vmem:[#allocation3 + $0x60] sm:$0xff]  ;;  %v74_v42 = vld [vmem:[#allocation3 + $0xf0] sm:$0xff] }
  0x30   :  { %v228_v39 = vpack.c.bf16 %v73_v37, %v72_v36  ;;  %v57_v41 = vld [vmem:[#allocation3 + $0x68] sm:$0xff]  ;;  %v75_v43 = vld [vmem:[#allocation3 + $0xf8] sm:$0xff]  ;;  %v58_v46 = vld [vmem:[#allocation3 + $0x70] sm:$0xff] }
  0x31   :  { %v230_v44 = vpack.c.bf16 %v57_v41, %v56_v40  ;;  %v232_v45 = vpack.c.bf16 %v75_v43, %v74_v42  ;;  %v59_v47 = vld [vmem:[#allocation3 + $0x78] sm:$0xff]  ;;  %v42_v49 = vld [vmem:[#allocation6] sm:$0xff] }
  0x32   :  { %215 = vmatpush3.bf16.msra.mxu0 %v214_v19  ;;  %v234_v48 = vpack.c.bf16 %v59_v47, %v58_v46 }
  0x33   :  { %217 = vmatprep.subr.bf16.mxu0 %v216_v20 }
  0x36   :  { %219 = vmatpush3.bf16.msra.mxu0 %v218_v26 }
  0x37   :  { %221 = vmatprep.subr.bf16.mxu0 %v220_v27 }
  0x3a   :  { %223 = vmatpush3.bf16.msra.mxu0 %v222_v32 }
  0x3b   :  { %225 = vmatprep.subr.bf16.mxu0 %v224_v33 }
  0x3e   :  { %227 = vmatpush3.bf16.msra.mxu0 %v226_v38 }
  0x3f   :  { %229 = vmatprep.subr.bf16.mxu0 %v228_v39 }
  0x42   :  { %231 = vmatpush3.bf16.msra.mxu0 %v230_v44 }
  0x43   :  { %233 = vmatprep.subr.bf16.mxu0 %v232_v45 }
  0x46   :  { %235 = vmatpush3.bf16.msra.mxu0 %v234_v48 }
  0x49   :  { %143 = vmatmul.mubr.f32.vlgmr.msra.gmra.mrb[0].mxu0 %v42_v49 }
 0x11c   :  { %v201_v50 = vpop.f32.mrb[0].mxu0 }
 0x11d   :  { %v202_v52 = vpop.f32.mrb[1].mxu0 }
 0x11e   :  { %v203_v53 = vadd.f32 %v202_v52, %v201_v50 }
 0x120   :  { %v145_v54 = vadd.f32 %v203_v53, %v77_v51 }
 0x122   :  { %v148_v55 = vmul.f32 0.5, %v145_v54 }
 0x124   :  { %241 = vtanh.f32 %v148_v55 }
 0x12e   :  { %v242_v56 = vpop.eup %241 }
 0x12f   :  { %v150_v57 = vmul.f32 0.5, %v242_v56 }
 0x131   :  { %v151_v58 = vadd.f32 0.5, %v150_v57 }
 0x133   :  { %152 = vst [vmem:[#allocation8] sm:$0xff] %v151_v58 }
 0x134   :  { %298 = shalt.err (!%p295_p6)
}
 0x135   :  { %s299_s15 = scalar_lea.hbm %s382_s3, 128 }
 0x136   :  { %p300_p7 = scmp.ne.s32.totalorder %s382_s3, %s299_s15  ;;  %p303_p8 = scmp.lt.u32.totalorder %s299_s15, %s382_s3 }
 0x138   :  { %p305_p9 = pnand %p303_p8, %p300_p7 }
 0x13a   :  { %308 = shalt.err (!%p305_p9)
}
 0x13b   :  { %162 = dma.vmem_to_hbm [thread:$0]  %s160_s12, 128, %s382_s3, [#allocation5]  }
 0x13c   :  { %313 = dma.done.wait [#allocation5], 128  }
 0x13d   :  { %314 = vsyncadd [#allocation5], 4294967168 }
 0x13e   :  { %166 = vsyncpa [#allocation4], 1 }
 0x13f   :  { %167 = vsyncpa [#allocation7], 1 }
 0x140   :  { %168 = vsyncpa [#allocation5], 1 }

</bundles_post_ra>
